<compile_context>
chip_gen: v7x
topology: tpu7x:2x2x1
jax: 0.10.0
libtpu: 0.0.40
codegen_flags: <defaults>
</compile_context>

<pallas_src>
import functools

import numpy as np
import jax
import jax.numpy as jnp
from jax import lax
from jax.experimental import pallas as pl
from jax.experimental.pallas import tpu as pltpu


# --------------------------------------------------------------------------
# Helpers
# --------------------------------------------------------------------------
def _pick_tile(dim, pref):
    """Pick a lane/sublane-aligned tile (pref) if it divides dim, else the
    full dim (full-extent blocks are always legal)."""
    return pref if (dim >= pref and dim % pref == 0) else dim


def _batch_tile(B):
    """Sessions per grid step for the fused GAT/soft-attention kernel."""
    for bt in (32, 16, 8):
        if B % bt == 0:
            return bt
    return B


# --------------------------------------------------------------------------
# Generic tiled matmul (fallback path for very large graph convs)
# --------------------------------------------------------------------------
def _matmul_kernel(a_ref, b_ref, o_ref, acc_ref):
    @pl.when(pl.program_id(2) == 0)
    def _():
        acc_ref[...] = jnp.zeros_like(acc_ref)

    acc_ref[...] += jnp.dot(a_ref[...], b_ref[...],
                            preferred_element_type=jnp.float32)

    @pl.when(pl.program_id(2) == pl.num_programs(2) - 1)
    def _():
        o_ref[...] = acc_ref[...]


def pallas_matmul(a, b):
    """o = a @ b, tiled M/N/K, bf16 MXU inputs, f32 accumulation."""
    M, K = a.shape
    K2, N = b.shape
    assert K == K2
    a = a.astype(jnp.bfloat16)
    b = b.astype(jnp.bfloat16)
    tm, tn, tk = _pick_tile(M, 256), _pick_tile(N, 512), _pick_tile(K, 512)
    return pl.pallas_call(
        _matmul_kernel,
        out_shape=jax.ShapeDtypeStruct((M, N), jnp.float32),
        grid=(M // tm, N // tn, K // tk),
        in_specs=[pl.BlockSpec((tm, tk), lambda i, j, k: (i, k)),
                  pl.BlockSpec((tk, tn), lambda i, j, k: (k, j))],
        out_specs=pl.BlockSpec((tm, tn), lambda i, j, k: (i, j)),
        scratch_shapes=[pltpu.VMEM((tm, tn), jnp.float32)],
        compiler_params=pltpu.CompilerParams(
            dimension_semantics=("parallel", "parallel", "arbitrary"),
            vmem_limit_bytes=32 * 1024 * 1024),
    )(a, b)


# --------------------------------------------------------------------------
# Fused ItemConv / SessionConv: layer propagation + L2-normalize + weighted sum
# --------------------------------------------------------------------------
def _graph_conv_fused_kernel(adj_ref, x_ref, coeff_ref, o_ref, *, num_layers):
    adj = adj_ref[...]                                      # (n, n) bf16
    x = x_ref[...]                                          # (n, E) f32

    def normalized(v):
        # F.normalize(p=2, dim=-1): v / max(||v||, 1e-12)
        n2 = jnp.sum(v * v, axis=-1, keepdims=True)
        return v * lax.rsqrt(jnp.maximum(n2, jnp.float32(1e-24)))

    acc = coeff_ref[0] * normalized(x)
    for l in range(1, num_layers + 1):
        x = jnp.dot(adj, x.astype(jnp.bfloat16),
                    preferred_element_type=jnp.float32)
        acc = acc + coeff_ref[l] * normalized(x)
    o_ref[...] = acc


def graph_conv(adjacency, embedding, layer_coeff):
    """ItemConv / SessionConv.  Fused single-kernel path when the graph fits
    comfortably in VMEM; tiled per-layer matmul fallback otherwise."""
    n, E = embedding.shape
    num_layers = int(layer_coeff.shape[0]) - 1
    coeff = layer_coeff.reshape(-1).astype(jnp.float32)     # (layers+1,)
    x = embedding.astype(jnp.float32)

    fused_bytes = 2 * n * n + 12 * n * E                    # bf16 adj + f32 state
    if fused_bytes <= 16 * 1024 * 1024:
        kernel = functools.partial(_graph_conv_fused_kernel,
                                   num_layers=num_layers)
        return pl.pallas_call(
            kernel,
            out_shape=jax.ShapeDtypeStruct((n, E), jnp.float32),
            grid=(1,),
            in_specs=[pl.BlockSpec((n, n), lambda i: (0, 0)),
                      pl.BlockSpec((n, E), lambda i: (0, 0)),
                      pl.BlockSpec(memory_space=pltpu.MemorySpace.SMEM)],
            out_specs=pl.BlockSpec((n, E), lambda i: (0, 0)),
            compiler_params=pltpu.CompilerParams(
                dimension_semantics=("arbitrary",),
                vmem_limit_bytes=32 * 1024 * 1024),
        )(adjacency.astype(jnp.bfloat16), x, coeff)

    # Fallback for large graphs: tiled matmuls per layer + JAX epilogue.
    adjacency = adjacency.astype(jnp.float32)
    outs = [x]
    for _ in range(num_layers):
        x = pallas_matmul(adjacency, x)
        outs.append(x)
    final = jnp.stack(outs, axis=0)
    norm = jnp.sqrt(jnp.sum(final * final, axis=-1, keepdims=True))
    final = final / jnp.maximum(norm, 1e-12)
    return jnp.sum(coeff[:, None, None] * final, axis=0)


# --------------------------------------------------------------------------
# Fused session pipeline: GAT + get_seq (one-hot gather) + soft attention.
# One batch tile (Bt sessions) per grid step.
# --------------------------------------------------------------------------
def _sess_fused_kernel(h0_ref, adj_ref, a_ref, seq_emb_ref, alias_ref,
                       mask_ref, slen_ref, pos_ref, w1_ref, w1b_ref,
                       g1w_ref, g1b_ref, g2w_ref, w2_ref, o_ref, *, alpha):
    Bt, N, E = h0_ref.shape
    L = seq_emb_ref.shape[1]

    h = h0_ref[...]                                # (Bt, N, E) f32
    adj = adj_ref[...]                             # (Bt, N, N) int32 (types 0..4)
    a = a_ref[...]                                 # (4, E) stacked a_0..a_3
    hb = h.astype(jnp.bfloat16)

    # ---- GAT attention ----
    def edge_scores(ak):                           # ak: (E,)
        # e_k[b,i,j] = sum_d h[b,i,d]*a_k[d]*h[b,j,d]   (batched NT matmul)
        e = jnp.einsum('bne,bme->bnm', (h * ak).astype(jnp.bfloat16), hb,
                       preferred_element_type=jnp.float32)
        return jnp.where(e > 0, e, jnp.float32(0.2) * e)   # LeakyReLU(0.2)

    e0 = edge_scores(a[0])
    e1 = edge_scores(a[1])
    e2 = edge_scores(a[2])
    e3 = edge_scores(a[3])

    att = jnp.full_like(e0, jnp.float32(-9e15))
    att = jnp.where(adj == 1, e0, att)
    att = jnp.where(adj == 2, e1, att)
    att = jnp.where(adj == 3, e2, att)
    att = jnp.where(adj == 4, e3, att)

    att = att - jnp.max(att, axis=-1, keepdims=True)        # stable softmax
    p = jnp.exp(att)
    p = p * pl.reciprocal(jnp.sum(p, axis=-1, keepdims=True), approx=True)
    hg = jnp.einsum('bnm,bme->bne', p.astype(jnp.bfloat16), hb,
                    preferred_element_type=jnp.float32)     # (Bt, N, E)

    # ---- get_seq: h[alias] via one-hot matmul, then blend (dropout=identity)
    alias = alias_ref[...]                                   # (Bt, L) int32
    onehot = (lax.broadcasted_iota(jnp.int32, (Bt, L, N), 2)
              == alias[:, :, None]).astype(jnp.bfloat16)     # (Bt, L, N)
    seq_g = jnp.einsum('bln,bne->ble', onehot, hg.astype(jnp.bfloat16),
                       preferred_element_type=jnp.float32)   # (Bt, L, E)
    seq = (1.0 - alpha) * seq_emb_ref[...] + alpha * seq_g   # (Bt, L, E)

    # ---- soft attention ----
    msk = mask_ref[...]                                      # (Bt, L, 1)
    inv_len = pl.reciprocal(slen_ref[...], approx=True)      # (Bt, 1)
    hs = jnp.sum(seq, axis=1) * inv_len                      # (Bt, E)

    w1 = w1_ref[...]                                         # (2E, E) = W1.T
    # position term is batch-independent -> one (L,E)x(E,E) dot per block.
    pos_term = (jnp.dot(pos_ref[...].astype(jnp.bfloat16),
                        w1[:E].astype(jnp.bfloat16),
                        preferred_element_type=jnp.float32)
                + w1b_ref[...])                              # (L, E)

    seq_b = seq.astype(jnp.bfloat16)
    w1s = jnp.broadcast_to(w1[E:].astype(jnp.bfloat16), (Bt, E, E))
    nh = jnp.einsum('ble,bef->blf', seq_b, w1s,
                    preferred_element_type=jnp.float32) + pos_term[None, :, :]
    nh = jnp.tanh(nh)                                        # (Bt, L, E)

    g1w = jnp.broadcast_to(g1w_ref[...].astype(jnp.bfloat16), (Bt, E, E))
    glu = (jnp.einsum('ble,bef->blf', nh.astype(jnp.bfloat16), g1w,
                      preferred_element_type=jnp.float32)
           + g1b_ref[...][None, :, :]
           + jnp.dot(hs.astype(jnp.bfloat16), g2w_ref[...].astype(jnp.bfloat16),
                     preferred_element_type=jnp.float32)[:, None, :])
    nh = jax.nn.sigmoid(glu)                                 # (Bt, L, E)

    # beta = nh @ w_2  (skinny rank-1 contraction -> VPU multiply + lane reduce)
    w2t = w2_ref[...]                                        # (1, E)
    beta = jnp.sum(nh * w2t[None, :, :], axis=-1, keepdims=True) * msk
    o_ref[...] = jnp.sum(beta * seq, axis=1)                 # (Bt, E)


def session_pipeline(emb1, items, gat_adj, reversed_sess_item, alias_session,
                     mask, session_len, params, alpha=0.8):
    """emb1[items] -> GAT -> blend with emb1[reversed_sess_item] -> soft attn."""
    B, L = reversed_sess_item.shape
    N = items.shape[1]
    E = emb1.shape[1]
    Bt = _batch_tile(B)

    # Table gathers stay in XLA (table generally does not fit VMEM).
    h0 = emb1[items]                         # (B, N, E)
    seq_emb = emb1[reversed_sess_item]       # (B, L, E)

    mask3 = mask.astype(jnp.float32).reshape(B, L, 1)
    slen = session_len.astype(jnp.float32).reshape(B, 1)
    pos_emb = params["pos_emb"][:L]
    w2t = params["w2"].reshape(1, E)

    kernel = functools.partial(_sess_fused_kernel, alpha=float(alpha))
    return pl.pallas_call(
        kernel,
        out_shape=jax.ShapeDtypeStruct((B, E), jnp.float32),
        grid=(B // Bt,),
        in_specs=[pl.BlockSpec((Bt, N, E), lambda b: (b, 0, 0)),
                  pl.BlockSpec((Bt, N, N), lambda b: (b, 0, 0)),
                  pl.BlockSpec((4, E), lambda b: (0, 0)),
                  pl.BlockSpec((Bt, L, E), lambda b: (b, 0, 0)),
                  pl.BlockSpec((Bt, L), lambda b: (b, 0)),
                  pl.BlockSpec((Bt, L, 1), lambda b: (b, 0, 0)),
                  pl.BlockSpec((Bt, 1), lambda b: (b, 0)),
                  pl.BlockSpec((L, E), lambda b: (0, 0)),
                  pl.BlockSpec((2 * E, E), lambda b: (0, 0)),
                  pl.BlockSpec((1, E), lambda b: (0, 0)),
                  pl.BlockSpec((E, E), lambda b: (0, 0)),
                  pl.BlockSpec((1, E), lambda b: (0, 0)),
                  pl.BlockSpec((E, E), lambda b: (0, 0)),
                  pl.BlockSpec((1, E), lambda b: (0, 0))],
        out_specs=pl.BlockSpec((Bt, E), lambda b: (b, 0)),
        compiler_params=pltpu.CompilerParams(
            dimension_semantics=("parallel",)),
    )(h0.astype(jnp.float32), gat_adj.astype(jnp.int32),
      params["gat_a"].astype(jnp.float32), seq_emb.astype(jnp.float32),
      alias_session.astype(jnp.int32), mask3, slen, pos_emb,
      params["w1_w"], params["w1_b"], params["glu1_w"], params["glu1_b"],
      params["glu2_w"], w2t)


# --------------------------------------------------------------------------
# Fused scores matmul + cross-entropy epilogue
#   scores = scale * (sel @ item_emb.T)    (no host-side transpose/copy)
#   lse/target-logit accumulated online across N tiles for the CE loss.
# --------------------------------------------------------------------------
def _scores_ce_kernel(x_ref, e_ref, tar_ref, scores_ref, lse_ref, tgt_ref,
                      m_sc, l_sc, t_sc, *, scale):
    nj = pl.program_id(1)

    @pl.when(nj == 0)
    def _():
        m_sc[...] = jnp.full_like(m_sc, -jnp.inf)
        l_sc[...] = jnp.zeros_like(l_sc)
        t_sc[...] = jnp.zeros_like(t_sc)

    s = jnp.float32(scale) * lax.dot_general(
        x_ref[...].astype(jnp.bfloat16), e_ref[...].astype(jnp.bfloat16),
        (((1,), (1,)), ((), ())), preferred_element_type=jnp.float32)  # (tm, tn)
    scores_ref[...] = s

    # online logsumexp across N tiles
    m_prev = m_sc[...]
    m_new = jnp.maximum(m_prev, jnp.max(s, axis=-1, keepdims=True))
    l_sc[...] = (l_sc[...] * jnp.exp(m_prev - m_new)
                 + jnp.sum(jnp.exp(s - m_new), axis=-1, keepdims=True))
    m_sc[...] = m_new

    # target-logit gather via lane-index mask
    tn = s.shape[1]
    col = nj * tn + lax.broadcasted_iota(jnp.int32, s.shape, 1)
    hit = (col == tar_ref[...]).astype(jnp.float32)         # tar block: (tm, 1)
    t_sc[...] += jnp.sum(s * hit, axis=-1, keepdims=True)

    @pl.when(nj == pl.num_programs(1) - 1)
    def _():
        lse_ref[...] = m_sc[...] + jnp.log(l_sc[...])
        tgt_ref[...] = t_sc[...]


def scores_with_ce(sel, item_emb, tar, scale):
    B, E = sel.shape
    n_node = item_emb.shape[0]
    tm = _pick_tile(B, 256)
    tn = _pick_tile(n_node, 512)
    kernel = functools.partial(_scores_ce_kernel, scale=float(scale))
    scores, lse, tgt = pl.pallas_call(
        kernel,
        out_shape=(jax.ShapeDtypeStruct((B, n_node), jnp.float32),
                   jax.ShapeDtypeStruct((B, 1), jnp.float32),
                   jax.ShapeDtypeStruct((B, 1), jnp.float32)),
        grid=(B // tm, n_node // tn),
        in_specs=[pl.BlockSpec((tm, E), lambda i, j: (i, 0)),
                  pl.BlockSpec((tn, E), lambda i, j: (j, 0)),
                  pl.BlockSpec((tm, 1), lambda i, j: (i, 0))],
        out_specs=(pl.BlockSpec((tm, tn), lambda i, j: (i, j)),
                   pl.BlockSpec((tm, 1), lambda i, j: (i, 0)),
                   pl.BlockSpec((tm, 1), lambda i, j: (i, 0))),
        scratch_shapes=[pltpu.VMEM((tm, 1), jnp.float32)] * 3,
        compiler_params=pltpu.CompilerParams(
            dimension_semantics=("parallel", "arbitrary"),
            vmem_limit_bytes=32 * 1024 * 1024),
    )(sel.astype(jnp.float32), item_emb.astype(jnp.float32),
      tar.astype(jnp.int32).reshape(B, 1))
    return scores, lse, tgt


# --------------------------------------------------------------------------
# Model glue
# --------------------------------------------------------------------------
def gnn_cl_forward(params, gnn_adjacency, reversed_sess_item, mask, session_len,
                   session_adj, tar, alias_session, gat_adj, items,
                   is_train=False):
    E = params["nodes_emb"].shape[1]
    zeros = jnp.zeros((1, E), jnp.float32)

    # ItemConv over the item-item graph (fused kernel).
    item_emb_gnn = graph_conv(gnn_adjacency, params["nodes_emb"],
                              params["item_b"])

    # Eval mode: dropout(0.3)/dropout(0.1) are identities -> emb1 == emb2, so
    # the whole per-branch pipeline is computed ONCE and results scaled by 2.
    emb1 = jnp.concatenate([zeros, item_emb_gnn], axis=0)         # (n_node+1, E)

    # Fused GAT + get_seq + soft attention (single pallas_call, shared by
    # both deduped branches).
    sel = session_pipeline(emb1, items, gat_adj, reversed_sess_item,
                           alias_session, mask, session_len, params, alpha=0.8)

    # SessionConv over the session-session graph.
    sel = graph_conv(session_adj, sel, params["sess_a"])

    # TODO(synk): is_train=True contrastive branch (g() with train-mode
    # BatchNorm1d + masked-similarity CE) is training-only; eval path == 0.
    con_loss = jnp.float32(0.0)

    # scores = (sel1+sel2) @ (emb1+emb2)[1:].T == 4 * sel @ item_emb_gnn.T,
    # with the cross-entropy fused into the matmul epilogue.  The reference's
    # `+1e-8` logit shift cancels exactly inside CE, so it is omitted.
    scores, lse, tgt_logit = scores_with_ce(sel, item_emb_gnn, tar, scale=4.0)
    loss = jnp.mean(lse - tgt_logit)
    return con_loss, loss, scores


# --------------------------------------------------------------------------
# Host-side preprocessing (deterministic reimplementation of data_masks_3)
# --------------------------------------------------------------------------
def data_masks_3(sessions_np):
    B, L = sessions_np.shape
    uniq_per = []
    for s in sessions_np:
        u = []
        for it in s:
            it = int(it)
            if it != 0 and it not in u:
                u.append(it)
        uniq_per.append(u)
    max_n = max(1, max(len(u) for u in uniq_per))
    items = np.zeros((B, max_n), dtype=np.int32)
    adj = np.zeros((B, max_n, max_n), dtype=np.int32)
    alias = np.zeros((B, L), dtype=np.int32)
    for b, s in enumerate(sessions_np):
        u = uniq_per[b]
        items[b, :len(u)] = u
        idx = {it: i for i, it in enumerate(u)}
        alias[b] = [idx.get(int(it), 0) for it in s]
        seq = [int(it) for it in s if int(it) != 0]
        for i in range(len(seq)):
            ui = idx[seq[i]]
            adj[b, ui, ui] = 1                                 # self edge -> a_0
            if i + 1 < len(seq):
                vi = idx[seq[i + 1]]
                if ui == vi:
                    continue
                if adj[b, vi, ui] == 2:                        # bi-directional -> a_3
                    adj[b, ui, vi] = 4
                    adj[b, vi, ui] = 4
                else:
                    adj[b, ui, vi] = 2                         # out edge -> a_1
                    adj[b, vi, ui] = 3                         # in edge  -> a_2
    return alias, adj, items


# --------------------------------------------------------------------------
# Deterministic parameter init (mirrors init_parameters: uniform(-stdv, stdv))
# --------------------------------------------------------------------------
def init_params(key, emb_size, n_node, num_layers):
    stdv = 1.0 / np.sqrt(emb_size)
    shapes = {
        "nodes_emb": (n_node, emb_size),
        "item_b": (num_layers + 1, 1, 1),
        "sess_a": (num_layers + 1, 1, 1),
        "gat_a": (4, emb_size),            # stacked a_0..a_3 (each (E,1) in torch)
        "pos_emb": (150, emb_size),
        "w1_w": (2 * emb_size, emb_size),  # stored as W1.T
        "w1_b": (1, emb_size),
        "w2": (emb_size, 1),
        "glu1_w": (emb_size, emb_size),    # stored as W.T
        "glu1_b": (1, emb_size),
        "glu2_w": (emb_size, emb_size),    # stored as W.T (no bias)
    }
    keys = jax.random.split(key, len(shapes))
    return {name: jax.random.uniform(k, shp, jnp.float32, -stdv, stdv)
            for (name, shp), k in zip(shapes.items(), keys)}


# --------------------------------------------------------------------------
if __name__ == "__main__":
    key = jax.random.PRNGKey(0)
    emb_size, n_node, num_layers, batch_size, L = 32, 64, 2, 4, 6

    k_param, k_sess, k_adj, k_sadj, k_tar = jax.random.split(key, 5)
    params = init_params(k_param, emb_size, n_node, num_layers)

    # sessions (reversed), 0 = padding
    sess = jax.random.randint(k_sess, (batch_size, L), 1, n_node + 1)
    lens = jnp.array([L, 4, 5, 3])
    reversed_sess_item = jnp.where(jnp.arange(L)[None, :] < lens[:, None],
                                   sess, 0).astype(jnp.int32)
    mask = (reversed_sess_item != 0).astype(jnp.float32)
    session_len = jnp.sum(mask, axis=1, keepdims=True)

    # item-item adjacency (row-normalized) and session-session adjacency
    adj_rand = (jax.random.uniform(k_adj, (n_node, n_node)) < 0.1).astype(jnp.float32)
    adj_rand = adj_rand + jnp.eye(n_node, dtype=jnp.float32)
    gnn_adjacency = adj_rand / jnp.sum(adj_rand, axis=1, keepdims=True)

    sadj = jax.random.uniform(k_sadj, (batch_size, batch_size)) + jnp.eye(batch_size)
    session_adj = sadj / jnp.sum(sadj, axis=1, keepdims=True)

    tar = jax.random.randint(k_tar, (batch_size,), 0, n_node).astype(jnp.int32)

    alias_np, gat_adj_np, items_np = data_masks_3(
        np.asarray(jax.device_get(reversed_sess_item)))
    alias_session = jnp.asarray(alias_np)
    gat_adj = jnp.asarray(gat_adj_np)
    items = jnp.asarray(items_np)

    con_loss, loss, scores = gnn_cl_forward(
        params, gnn_adjacency, reversed_sess_item, mask, session_len,
        session_adj, tar, alias_session, gat_adj, items, is_train=False)

    jax.block_until_ready((con_loss, loss, scores))
    print("KERNEL_OK")
</pallas_src>

<mosaic_0001>
module attributes {stable_mosaic.version = 11 : i64} {
  func.func @_graph_conv_fused_kernel(%arg0: i32, %arg1: memref<64x64xbf16, #tpu.memory_space<vmem>>, %arg2: memref<64x32xf32, #tpu.memory_space<vmem>>, %arg3: memref<3xf32, #tpu.memory_space<smem>>, %arg4: memref<64x32xf32, #tpu.memory_space<vmem>>) attributes {dimension_semantics = [#tpu.dimension_semantics<arbitrary>], iteration_bounds = array<i64: 1>, scalar_prefetch = 0 : i64, scratch_operands = 0 : i64, tpu.core_type = #tpu.core_type<tc>, window_params = [{pipeline_mode = #tpu.pipeline_mode<synchronous>, transform_indices = @transform_0, window_bounds = array<i64: 64, 64>}, {pipeline_mode = #tpu.pipeline_mode<synchronous>, transform_indices = @transform_1, window_bounds = array<i64: 64, 32>}, {transform_indices = @transform_2, window_bounds = array<i64: 3>}, {pipeline_mode = #tpu.pipeline_mode<synchronous>, transform_indices = @transform_3, window_bounds = array<i64: 64, 32>}]} {
    %c0 = arith.constant 0 : index
    %c0_0 = arith.constant 0 : index
    %0 = vector.load %arg1[%c0, %c0_0] : memref<64x64xbf16, #tpu.memory_space<vmem>>, vector<64x64xbf16>
    %c0_1 = arith.constant 0 : index
    %c0_2 = arith.constant 0 : index
    %1 = vector.load %arg2[%c0_1, %c0_2] : memref<64x32xf32, #tpu.memory_space<vmem>>, vector<64x32xf32>
    %c0_3 = arith.constant 0 : index
    %2 = memref.load %arg3[%c0_3] : memref<3xf32, #tpu.memory_space<smem>>
    %3 = arith.mulf %1, %1 : vector<64x32xf32>
    %cst = arith.constant dense<0.000000e+00> : vector<64xf32>
    %4 = vector.multi_reduction <add>, %3, %cst [1] : vector<64x32xf32> to vector<64xf32>
    %5 = vector.shape_cast %4 : vector<64xf32> to vector<64x1xf32>
    %cst_4 = arith.constant 1.000000e-24 : f32
    %6 = vector.broadcast %cst_4 : f32 to vector<64x1xf32>
    %7 = arith.maximumf %5, %6 : vector<64x1xf32>
    %8 = math.rsqrt %7 : vector<64x1xf32>
    %9 = vector.broadcast %8 : vector<64x1xf32> to vector<64x32xf32>
    %10 = arith.mulf %1, %9 : vector<64x32xf32>
    %11 = vector.broadcast %2 : f32 to vector<64x32xf32>
    %12 = arith.mulf %11, %10 : vector<64x32xf32>
    %13 = arith.truncf %1 : vector<64x32xf32> to vector<64x32xbf16>
    %cst_5 = arith.constant dense<0.000000e+00> : vector<64x32xf32>
    %14 = tpu.matmul %0, %13, %cst_5 {dimension_numbers = #tpu.dot_dimension_numbers<[1], [0], [0], [1], [0, 0, 1, 1], [], []>} : vector<64x64xbf16>, vector<64x32xbf16>, vector<64x32xf32> -> vector<64x32xf32>
    %c1 = arith.constant 1 : index
    %15 = memref.load %arg3[%c1] : memref<3xf32, #tpu.memory_space<smem>>
    %16 = arith.mulf %14, %14 : vector<64x32xf32>
    %cst_6 = arith.constant dense<0.000000e+00> : vector<64xf32>
    %17 = vector.multi_reduction <add>, %16, %cst_6 [1] : vector<64x32xf32> to vector<64xf32>
    %18 = vector.shape_cast %17 : vector<64xf32> to vector<64x1xf32>
    %cst_7 = arith.constant 1.000000e-24 : f32
    %19 = vector.broadcast %cst_7 : f32 to vector<64x1xf32>
    %20 = arith.maximumf %18, %19 : vector<64x1xf32>
    %21 = math.rsqrt %20 : vector<64x1xf32>
    %22 = vector.broadcast %21 : vector<64x1xf32> to vector<64x32xf32>
    %23 = arith.mulf %14, %22 : vector<64x32xf32>
    %24 = vector.broadcast %15 : f32 to vector<64x32xf32>
    %25 = arith.mulf %24, %23 : vector<64x32xf32>
    %26 = arith.addf %12, %25 : vector<64x32xf32>
    %27 = arith.truncf %14 : vector<64x32xf32> to vector<64x32xbf16>
    %cst_8 = arith.constant dense<0.000000e+00> : vector<64x32xf32>
    %28 = tpu.matmul %0, %27, %cst_8 {dimension_numbers = #tpu.dot_dimension_numbers<[1], [0], [0], [1], [0, 0, 1, 1], [], []>} : vector<64x64xbf16>, vector<64x32xbf16>, vector<64x32xf32> -> vector<64x32xf32>
    %c2 = arith.constant 2 : index
    %29 = memref.load %arg3[%c2] : memref<3xf32, #tpu.memory_space<smem>>
    %30 = arith.mulf %28, %28 : vector<64x32xf32>
    %cst_9 = arith.constant dense<0.000000e+00> : vector<64xf32>
    %31 = vector.multi_reduction <add>, %30, %cst_9 [1] : vector<64x32xf32> to vector<64xf32>
    %32 = vector.shape_cast %31 : vector<64xf32> to vector<64x1xf32>
    %cst_10 = arith.constant 1.000000e-24 : f32
    %33 = vector.broadcast %cst_10 : f32 to vector<64x1xf32>
    %34 = arith.maximumf %32, %33 : vector<64x1xf32>
    %35 = math.rsqrt %34 : vector<64x1xf32>
    %36 = vector.broadcast %35 : vector<64x1xf32> to vector<64x32xf32>
    %37 = arith.mulf %28, %36 : vector<64x32xf32>
    %38 = vector.broadcast %29 : f32 to vector<64x32xf32>
    %39 = arith.mulf %38, %37 : vector<64x32xf32>
    %40 = arith.addf %26, %39 : vector<64x32xf32>
    %c0_11 = arith.constant 0 : index
    %c0_12 = arith.constant 0 : index
    %41 = vector.load %arg4[%c0_11, %c0_12] : memref<64x32xf32, #tpu.memory_space<vmem>>, vector<64x32xf32>
    tpu.vector_store %arg4[%c0_11, %c0_12], %40 {strides = array<i32>} : memref<64x32xf32, #tpu.memory_space<vmem>>, vector<64x32xf32>,
    return
  }
  func.func @transform_0(%arg0: i32) -> (i32, i32) {
    %c0_i32 = arith.constant 0 : i32
    %c0_i32_0 = arith.constant 0 : i32
    %c0_i32_1 = arith.constant 0 : i32
    return %c0_i32, %c0_i32_0 : i32, i32
  }
  func.func @transform_1(%arg0: i32) -> (i32, i32) {
    %c0_i32 = arith.constant 0 : i32
    %c0_i32_0 = arith.constant 0 : i32
    %c0_i32_1 = arith.constant 0 : i32
    return %c0_i32, %c0_i32_0 : i32, i32
  }
  func.func @transform_2(%arg0: i32) -> i32 {
    %c0_i32 = arith.constant 0 : i32
    %c0_i32_0 = arith.constant 0 : i32
    return %c0_i32 : i32
  }
  func.func @transform_3(%arg0: i32) -> (i32, i32) {
    %c0_i32 = arith.constant 0 : i32
    %c0_i32_0 = arith.constant 0 : i32
    %c0_i32_1 = arith.constant 0 : i32
    return %c0_i32, %c0_i32_0 : i32, i32
  }
}

</mosaic_0001>

<bundles_post_ra>
// kernel: tpu_custom_call.1
= control target key start
LH: loop header
LB: loop body
LE: loop exit
PB: predicated region body
PF: predicated region fallthrough
CT: control target
= control target key end

     0   :  { %8 = vsyncpa [#allocation3], 0  ;;  %s871_s0 = inlined_call_operand.vmem [shape: bf16[64,64], index: 0, kind: input, shape index: {}]   ;;  %s872_s1 = inlined_call_operand.vmem [shape: f32[64,32], index: 1, kind: input, shape index: {}]   ;;  %s873_s2 = inlined_call_operand.vmem [shape: f32[3], index: 2, kind: input, shape index: {}]   ;;  %s874_s3 = inlined_call_operand.vmem [shape: f32[64,32], index: 3, kind: output, shape index: {}]  }
   0x1   :  { %s19_s14 = sshll.u32 %s873_s2, 4  ;;  %s20_s14 = int_to_ptr.vmem [resolvable:$true] %s19_s14 }
   0x2   :  { %s558_s15 = scalar_lea.vmem %s20_s14, 16  ;;  %p563_p1 = scmp.lt.s32.totalorder %s20_s14, %s20_s14 }
   0x3   :  { %p559_p0 = scmp.ne.s32.totalorder %s20_s14, %s558_s15  ;;  %p564_p2 = scmp.lt.s32.totalorder %s558_s15, %s558_s15 }
   0x5   :  { %p565_p3 = por %p564_p2, %p563_p1 }
   0x7   :  { %p566_p4 = pnand %p565_p3, %p559_p0 }
   0x9   :  { %569 = shalt.err (!%p566_p4)
}
   0xa   :  { %s572_s16 = smov [#allocation2]  }
   0xb   :  { %22 = dma.vmem_to_smem %s20_s14, 16, %s572_s16, [#allocation3]  }
   0xc   :  { %570 = dma.done.wait [#allocation3], 16  }
   0xd   :  { %571 = vsyncadd [#allocation3], 4294967280 }
   0xe   :  { %26 = sfence }
   0xf   :  { %v599_v0 = vld [vmem:[%s872_s1] sm:$0xff]  ;;  %v604_v1 = vld [vmem:[%s872_s1 + $0x8] sm:$0xff]  ;;  %v609_v2 = vld [vmem:[%s872_s1 + $0x10] sm:$0xff]  ;;  %vm53_vm0 = vcmask 261120   ;;  %vm135_vm1 = vcmask 523264   ;;  %s778_s12 = sld [smem:[#allocation2 + $0x1]] }
  0x10   :  { %v111_v3 = vpack.c.bf16 %v604_v1, %v599_v0  ;;  %v616_v4 = vld [vmem:[%s872_s1 + $0x18] sm:$0xff]  ;;  %v45_v5 = vmul.f32 %v599_v0, %v599_v0  ;;  %v47_v6 = vmul.f32 %v609_v2, %v609_v2  ;;  %v46_v7 = vmul.f32 %v604_v1, %v604_v1  ;;  %v629_v9 = vld [vmem:[%s872_s1 + $0x20] sm:$0xff]  ;;  %v634_v10 = vld [vmem:[%s872_s1 + $0x28] sm:$0xff]  ;;  %s780_s13 = sld [smem:[#allocation2 + $0x2]] }
  0x11   :  { %v112_v8 = vpack.c.bf16 %v616_v4, %v609_v2  ;;  %v506_v11 = vld [vmem:[%s871_s0] sm:$0xff]   ;;  %v48_v13 = vmul.f32 %v616_v4, %v616_v4  ;;  %v113_v15 = vpack.c.bf16 %v634_v10, %v629_v9  ;;  %v49_v17 = vmul.f32 %v629_v9, %v629_v9  ;;  %v652_v18 = vld [vmem:[%s872_s1 + $0x30] sm:$0xff]  ;;  %v657_v19 = vld [vmem:[%s872_s1 + $0x38] sm:$0xff] }
  0x12   :  { %473 = vmatprep.subr.bf16.mxu0 %v111_v3  ;;  %v54_v12 = vsel %vm53_vm0, %v45_v5, 0.0  ;;  %v60_v14 = vsel %vm53_vm0, %v47_v6, 0.0  ;;  %481 = vmatprep.mubr.msk.bf16.mxu0 %vm135_vm1, %v506_v11  ;;  %v57_v16 = vsel %vm53_vm0, %v46_v7, 0.0  ;;  %v50_v21 = vmul.f32 %v634_v10, %v634_v10  ;;  %v507_v27 = vld [vmem:[%s871_s0 + $0x8] sm:$0xff]   ;;  %v508_v28 = vld [vmem:[%s871_s0 + $0x10] sm:$0xff]   ;;  %v509_v29 = vld [vmem:[%s871_s0 + $0x18] sm:$0xff]  }
  0x13   :  { %474 = vmatpush3.bf16.msra.mxu0 %v111_v3  ;;  %55 = vadd.xlane.f32.xlu0 %v54_v12  ;;  %v63_v20 = vsel %vm53_vm0, %v48_v13, 0.0  ;;  %v114_v22 = vpack.c.bf16 %v657_v19, %v652_v18  ;;  %v66_v23 = vsel %vm53_vm0, %v49_v17, 0.0  ;;  %v51_v24 = vmul.f32 %v652_v18, %v652_v18  ;;  %s776_s0 = sld [smem:[#allocation2]] }
  0x14   :  { %475 = vmatprep.subr.bf16.mxu0 %v112_v8  ;;  %61 = vadd.xlane.f32.xlu1 %v60_v14  ;;  %v69_v25 = vsel %vm53_vm0, %v50_v21, 0.0  ;;  %v52_v30 = vmul.f32 %v657_v19, %v657_v19 }
  0x15   :  { %497 = vmatprep.mubr.msk.bf16.mxu1 %vm135_vm1, %v506_v11  ;;  %v72_v26 = vsel %vm53_vm0, %v51_v24, 0.0 }
  0x16   :  { %v75_v31 = vsel %vm53_vm0, %v52_v30, 0.0 }
  0x17   :  { %476 = vmatpush3.bf16.msra.mxu0 %v112_v8  ;;  %58 = vadd.xlane.f32.xlu0 %v57_v16 }
  0x18   :  { %477 = vmatprep.subr.bf16.mxu0 %v113_v15  ;;  %64 = vadd.xlane.f32.xlu1 %v63_v20 }
  0x1b   :  { %478 = vmatpush3.bf16.msra.mxu0 %v113_v15  ;;  %67 = vadd.xlane.f32.xlu0 %v66_v23 }
  0x1c   :  { %479 = vmatprep.subr.bf16.mxu0 %v114_v22  ;;  %70 = vadd.xlane.f32.xlu1 %v69_v25 }
  0x1f   :  { %480 = vmatpush3.bf16.msra.mxu0 %v114_v22  ;;  %73 = vadd.xlane.f32.xlu0 %v72_v26 }
  0x20   :  { %76 = vadd.xlane.f32.xlu1 %v75_v31 }
  0x22   :  { %482 = vmatmul.mubr.msk.bf16.vlgmr.msra.gmra.mrb[0].mxu0 %vm135_vm1, %v507_v27 }
  0x23   :  { %485 = vmatprep.mubr.msk.bf16.mxu0 %vm135_vm1, %v508_v28 }
  0x2a   :  { %486 = vmatmul.mubr.msk.bf16.gmra.mrb[4].mxu0 %vm135_vm1, %v509_v29 }
  0xf5   :  { %v685_v32 = vpop.f32.mrb[0].mxu0 }
  0xf6   :  { %v687_v33 = vpop.f32.mrb[1].mxu0  ;;  %v216_v34 = vmul.f32 %v685_v32, %v685_v32 }
  0xf7   :  { %v691_v35 = vpop.f32.mrb[2].mxu0  ;;  %v214_v40 = vmul.f32 %v687_v33, %v687_v33 }
  0xf8   :  { %v288_v36 = vpack.c.bf16 %v691_v35, %v685_v32  ;;  %v695_v37 = vpop.f32.mrb[3].mxu0  ;;  %v228_v38 = vsel %vm53_vm0, %v216_v34, 0.0  ;;  %v217_v39 = vmul.f32 %v691_v35, %v691_v35 }
  0xf9   :  { %229 = vadd.xlane.f32.xlu0 %v228_v38  ;;  %v287_v41 = vpack.c.bf16 %v695_v37, %v687_v33  ;;  %v215_v43 = vmul.f32 %v695_v37, %v695_v37  ;;  %v222_v44 = vsel %vm53_vm0, %v214_v40, 0.0 }
  0xfa   :  { %v231_v42 = vsel %vm53_vm0, %v217_v39, 0.0 }
  0xfb   :  { %232 = vadd.xlane.f32.xlu1 %v231_v42  ;;  %489 = vmatprep.subr.bf16.mxu1 %v287_v41  ;;  %v225_v47 = vsel %vm53_vm0, %v215_v43, 0.0 }
  0xfc   :  { %490 = vmatpush3.bf16.msra.mxu1 %v287_v41 }
  0xfd   :  { %223 = vadd.xlane.f32.xlu0 %v222_v44  ;;  %v708_v45 = vpop.f32.mrb[4].mxu0  ;;  %491 = vmatprep.subr.bf16.mxu1 %v288_v36 }
  0xfe   :  { %v710_v46 = vpop.f32.mrb[5].mxu0  ;;  %v220_v48 = vmul.f32 %v708_v45, %v708_v45 }
  0xff   :  { %226 = vadd.xlane.f32.xlu1 %v225_v47  ;;  %v715_v49 = vpop.f32.mrb[6].mxu0  ;;  %v218_v54 = vmul.f32 %v710_v46, %v710_v46 }
 0x100   :  { %v290_v50 = vpack.c.bf16 %v715_v49, %v708_v45  ;;  %v719_v51 = vpop.f32.mrb[7].mxu0  ;;  %492 = vmatpush3.bf16.msra.mxu1 %v288_v36  ;;  %v240_v52 = vsel %vm53_vm0, %v220_v48, 0.0  ;;  %v221_v53 = vmul.f32 %v715_v49, %v715_v49 }
 0x101   :  { %v289_v55 = vpack.c.bf16 %v719_v51, %v710_v46  ;;  %241 = vadd.xlane.f32.xlu0 %v240_v52  ;;  %v219_v56 = vmul.f32 %v719_v51, %v719_v51  ;;  %v234_v58 = vsel %vm53_vm0, %v218_v54, 0.0 }
 0x102   :  { %v243_v57 = vsel %vm53_vm0, %v221_v53, 0.0 }
 0x103   :  { %244 = vadd.xlane.f32.xlu1 %v243_v57  ;;  %493 = vmatprep.subr.bf16.mxu1 %v289_v55  ;;  %v237_v59 = vsel %vm53_vm0, %v219_v56, 0.0 }
 0x104   :  { %494 = vmatpush3.bf16.msra.mxu1 %v289_v55 }
 0x105   :  { %235 = vadd.xlane.f32.xlu0 %v234_v58  ;;  %495 = vmatprep.subr.bf16.mxu1 %v290_v50 }
 0x107   :  { %238 = vadd.xlane.f32.xlu1 %v237_v59 }
 0x108   :  { %496 = vmatpush3.bf16.msra.mxu1 %v290_v50 }
 0x10b   :  { %498 = vmatmul.mubr.msk.bf16.vlgmr.msra.gmra.mrb[0].mxu1 %vm135_vm1, %v507_v27 }
 0x10c   :  { %501 = vmatprep.mubr.msk.bf16.mxu1 %vm135_vm1, %v508_v28  ;;  %v56_v28 = vpop.xlane.xlu0 %55 }
 0x10d   :  { %v78_v43 = vmax.f32 %v56_v28, 1e-24 }
 0x10f   :  { %510 = vrsqrt.f32 %v78_v43  ;;  %v785_v43 = vstv %s776_s0 }
 0x110   :  { %v59_v30 = vpop.xlane.xlu0 %58 }
 0x111   :  { %v79_v48 = vmax.f32 %v59_v30, 1e-24 }
 0x113   :  { %502 = vmatmul.mubr.msk.bf16.gmra.mrb[4].mxu1 %vm135_vm1, %v509_v29  ;;  %v62_v29 = vpop.xlane.xlu1 %61 }
 0x114   :  { %v68_v34 = vpop.xlane.xlu0 %67  ;;  %v80_v47 = vmax.f32 %v62_v29, 1e-24 }
 0x115   :  { %v82_v54 = vmax.f32 %v68_v34, 1e-24 }
 0x116   :  { %512 = vrsqrt.f32 %v80_v47 }
 0x117   :  { %v65_v31 = vpop.xlane.xlu1 %64  ;;  %514 = vrsqrt.f32 %v79_v48 }
 0x118   :  { %v74_v38 = vpop.xlane.xlu0 %73  ;;  %v81_v50 = vmax.f32 %v65_v31, 1e-24 }
 0x119   :  { %v84_v59 = vmax.f32 %v74_v38, 1e-24 }
 0x11a   :  { %516 = vrsqrt.f32 %v81_v50 }
 0x11b   :  { %v71_v36 = vpop.xlane.xlu1 %70 }
 0x11c   :  { %v83_v57 = vmax.f32 %v71_v36, 1e-24 }
 0x11f   :  { %v77_v39 = vpop.xlane.xlu1 %76 }
 0x186   :  { %v230_v40 = vpop.xlane.xlu0 %229 }
 0x187   :  { %v248_v52 = vmax.f32 %v230_v40, 1e-24 }
 0x188   :  { %v233_v41 = vpop.xlane.xlu1 %232 }
 0x189   :  { %v249_v55 = vmax.f32 %v233_v41, 1e-24  ;;  %518 = vrsqrt.f32 %v248_v52 }
 0x18a   :  { %v224_v42 = vpop.xlane.xlu0 %223  ;;  %520 = vrsqrt.f32 %v82_v54 }
 0x18b   :  { %v246_v58 = vmax.f32 %v224_v42, 1e-24  ;;  %522 = vrsqrt.f32 %v249_v55 }
 0x18c   :  { %v227_v44 = vpop.xlane.xlu1 %226  ;;  %524 = vrsqrt.f32 %v83_v57 }
 0x18d   :  { %526 = vrsqrt.f32 %v246_v58 }
 0x18e   :  { %v242_v53 = vpop.xlane.xlu0 %241  ;;  %528 = vrsqrt.f32 %v84_v59 }
 0x190   :  { %v245_v56 = vpop.xlane.xlu1 %244 }
 0x191   :  { %v253_v28 = vmax.f32 %v245_v56, 1e-24 }
 0x1de   :  { %v736_v60 = vpop.f32.mrb[0].mxu1 }
 0x1df   :  { %v359_v61 = vmul.f32 %v736_v60, %v736_v60  ;;  %v740_v62 = vpop.f32.mrb[1].mxu1 }
 0x1e0   :  { %v742_v63 = vpop.f32.mrb[2].mxu1  ;;  %v357_v3 = vmul.f32 %v740_v62, %v740_v62 }
 0x1e1   :  { %v360_v5 = vmul.f32 %v742_v63, %v742_v63  ;;  %v748_v6 = vpop.f32.mrb[3].mxu1  ;;  %v371_v7 = vsel %vm53_vm0, %v359_v61, 0.0  ;;  %v247_v61 = vmax.f32 %v227_v44, 1e-24  ;;  %v788_v44 = vstv %s778_s12 }
 0x1e2   :  { %372 = vadd.xlane.f32.xlu0 %v371_v7  ;;  %v358_v8 = vmul.f32 %v748_v6, %v748_v6  ;;  %v365_v12 = vsel %vm53_vm0, %v357_v3, 0.0  ;;  %v236_v3 = vpop.xlane.xlu0 %235  ;;  %v252_v7 = vmax.f32 %v242_v53, 1e-24 }
 0x1e3   :  { %v374_v11 = vsel %vm53_vm0, %v360_v5, 0.0  ;;  %v85_v5 = vmax.f32 %v77_v39, 1e-24  ;;  %530 = vrsqrt.f32 %v247_v61 }
 0x1e4   :  { %375 = vadd.xlane.f32.xlu1 %v374_v11  ;;  %v368_v15 = vsel %vm53_vm0, %v358_v8, 0.0  ;;  %v239_v8 = vpop.xlane.xlu1 %238  ;;  %v511_v11 = vpop.eup %510 }
 0x1e5   :  { %532 = vrsqrt.f32 %v85_v5 }
 0x1e6   :  { %366 = vadd.xlane.f32.xlu0 %v365_v12  ;;  %v755_v13 = vpop.f32.mrb[4].mxu1  ;;  %v250_v12 = vmax.f32 %v236_v3, 1e-24  ;;  %534 = vrsqrt.f32 %v252_v7  ;;  %v801_v7 = vstv %s780_s13 }
 0x1e7   :  { %v757_v14 = vpop.f32.mrb[5].mxu1  ;;  %v363_v21 = vmul.f32 %v755_v13, %v755_v13 }
 0x1e8   :  { %v361_v16 = vmul.f32 %v757_v14, %v757_v14  ;;  %v762_v17 = vpop.f32.mrb[6].mxu1  ;;  %369 = vadd.xlane.f32.xlu1 %v368_v15 }
 0x1e9   :  { %v764_v20 = vpop.f32.mrb[7].mxu1  ;;  %v364_v24 = vmul.f32 %v762_v17, %v762_v17  ;;  %v383_v26 = vsel %vm53_vm0, %v363_v21, 0.0 }
 0x1ea   :  { %v362_v22 = vmul.f32 %v764_v20, %v764_v20  ;;  %v377_v23 = vsel %vm53_vm0, %v361_v16, 0.0  ;;  %v513_v16 = vpop.eup %512 }
 0x1eb   :  { %378 = vadd.xlane.f32.xlu0 %v377_v23  ;;  %v386_v27 = vsel %vm53_vm0, %v364_v24, 0.0  ;;  %v251_v23 = vmax.f32 %v239_v8, 1e-24  ;;  %v96_v39 = vmul.f32 %v513_v16, %v609_v2  ;;  %v94_v2 = vmul.f32 %v511_v11, %v599_v0 }
 0x1ec   :  { %v380_v25 = vsel %vm53_vm0, %v362_v22, 0.0  ;;  %v515_v22 = vpop.eup %514 }
 0x1ed   :  { %381 = vadd.xlane.f32.xlu1 %v380_v25  ;;  %v517_v25 = vpop.eup %516  ;;  %v105_v55 = vmul.f32 %v785_v43, %v96_v39  ;;  %v95_v56 = vmul.f32 %v515_v22, %v604_v1 }
 0x1ee   :  { %v97_v48 = vmul.f32 %v517_v25, %v616_v4 }
 0x1ef   :  { %384 = vadd.xlane.f32.xlu0 %v383_v26  ;;  %v104_v16 = vmul.f32 %v785_v43, %v95_v56 }
 0x1f0   :  { %v106_v3 = vmul.f32 %v785_v43, %v97_v48 }
 0x1f1   :  { %387 = vadd.xlane.f32.xlu1 %v386_v27  ;;  %v519_v27 = vpop.eup %518 }
 0x1f2   :  { %v521_v30 = vpop.eup %520  ;;  %v264_v40 = vmul.f32 %v519_v27, %v685_v32 }
 0x1f3   :  { %v523_v34 = vpop.eup %522 }
 0x1f4   :  { %v525_v38 = vpop.eup %524  ;;  %v265_v50 = vmul.f32 %v523_v34, %v691_v35  ;;  %v273_v57 = vmul.f32 %v788_v44, %v264_v40 }
 0x1f5   :  { %v527_v42 = vpop.eup %526 }
 0x1f6   :  { %v529_v47 = vpop.eup %528  ;;  %v262_v58 = vmul.f32 %v527_v42, %v687_v33  ;;  %v274_v5 = vmul.f32 %v788_v44, %v265_v50 }
 0x1f7   :  { %v531_v53 = vpop.eup %530  ;;  %v100_v42 = vmul.f32 %v529_v47, %v652_v18 }
 0x1f8   :  { %v533_v54 = vpop.eup %532  ;;  %v263_v0 = vmul.f32 %v531_v53, %v695_v37  ;;  %v271_v22 = vmul.f32 %v788_v44, %v262_v58 }
 0x1f9   :  { %v535_v4 = vpop.eup %534 }
 0x26f   :  { %v373_v15 = vpop.xlane.xlu0 %372 }
 0x270   :  { %v391_v21 = vmax.f32 %v373_v15, 1e-24  ;;  %v103_v15 = vmul.f32 %v785_v43, %v94_v2 }
 0x271   :  { %v376_v24 = vpop.xlane.xlu1 %375 }
 0x272   :  { %536 = vrsqrt.f32 %v391_v21  ;;  %v392_v26 = vmax.f32 %v376_v24, 1e-24  ;;  %v281_v21 = vadd.f32 %v273_v57, %v105_v55 }
 0x273   :  { %538 = vrsqrt.f32 %v250_v12  ;;  %v367_v29 = vpop.xlane.xlu0 %366 }
 0x274   :  { %540 = vrsqrt.f32 %v392_v26  ;;  %v389_v31 = vmax.f32 %v367_v29, 1e-24  ;;  %v272_v29 = vmul.f32 %v788_v44, %v263_v0 }
 0x275   :  { %542 = vrsqrt.f32 %v251_v23  ;;  %v370_v36 = vpop.xlane.xlu1 %369 }
 0x276   :  { %544 = vrsqrt.f32 %v389_v31  ;;  %v390_v41 = vmax.f32 %v370_v36, 1e-24 }
 0x277   :  { %546 = vrsqrt.f32 %v253_v28  ;;  %v282_v28 = vadd.f32 %v274_v5, %v106_v3 }
 0x278   :  { %548 = vrsqrt.f32 %v390_v41  ;;  %v379_v52 = vpop.xlane.xlu0 %378 }
 0x279   :  { %v393_v32 = vmax.f32 %v379_v52, 1e-24  ;;  %v101_v52 = vmul.f32 %v533_v54, %v657_v19  ;;  %v109_v54 = vmul.f32 %v785_v43, %v100_v42 }
 0x27a   :  { %v382_v59 = vpop.xlane.xlu1 %381 }
 0x27b   :  { %550 = vrsqrt.f32 %v393_v32  ;;  %v394_v35 = vmax.f32 %v382_v59, 1e-24 }
 0x27c   :  { %v537_v61 = vpop.eup %536  ;;  %v385_v8 = vpop.xlane.xlu0 %384 }
 0x27d   :  { %v539_v11 = vpop.eup %538  ;;  %v407_v1 = vmul.f32 %v537_v61, %v736_v60  ;;  %552 = vrsqrt.f32 %v394_v35  ;;  %v395_v12 = vmax.f32 %v385_v8, 1e-24  ;;  %v98_v60 = vmul.f32 %v521_v30, %v629_v9 }
 0x27e   :  { %v541_v33 = vpop.eup %540  ;;  %v388_v23 = vpop.xlane.xlu1 %387  ;;  %v266_v31 = vmul.f32 %v539_v11, %v710_v46  ;;  %v279_v9 = vadd.f32 %v271_v22, %v103_v15 }
 0x27f   :  { %v543_v24 = vpop.eup %542  ;;  %v416_v37 = vmul.f32 %v801_v7, %v407_v1  ;;  %v408_v25 = vmul.f32 %v541_v33, %v742_v63  ;;  %554 = vrsqrt.f32 %v395_v12  ;;  %v396_v26 = vmax.f32 %v388_v23, 1e-24 }
 0x280   :  { %v545_v27 = vpop.eup %544  ;;  %v99_v63 = vmul.f32 %v525_v38, %v634_v10  ;;  %v267_v48 = vmul.f32 %v543_v24, %v719_v51  ;;  %v268_v10 = vmul.f32 %v535_v4, %v708_v45  ;;  %v275_v18 = vmul.f32 %v788_v44, %v266_v31 }
 0x281   :  { %v547_v34 = vpop.eup %546  ;;  %v424_v36 = vadd.f32 %v416_v37, %v281_v21  ;;  %v417_v39 = vmul.f32 %v801_v7, %v408_v25  ;;  %v405_v40 = vmul.f32 %v545_v27, %v740_v62  ;;  %556 = vrsqrt.f32 %v396_v26 }
 0x282   :  { %v549_v41 = vpop.eup %548  ;;  %v107_v62 = vmul.f32 %v785_v43, %v98_v60  ;;  %v280_v38 = vadd.f32 %v272_v29, %v104_v16  ;;  %v269_v47 = vmul.f32 %v547_v34, %v715_v49  ;;  %v108_v2 = vmul.f32 %v785_v43, %v99_v63 }
 0x283   :  { %432 = vst.msk [vmem:[%s874_s3 + $0x10] sm:$0xff] %vm53_vm0, %v424_v36  ;;  %v425_v46 = vadd.f32 %v417_v39, %v282_v28  ;;  %v414_v30 = vmul.f32 %v801_v7, %v405_v40  ;;  %v406_v50 = vmul.f32 %v549_v41, %v748_v6  ;;  %v276_v19 = vmul.f32 %v788_v44, %v267_v48 }
 0x284   :  { %v277_v55 = vmul.f32 %v788_v44, %v268_v10  ;;  %v283_v56 = vadd.f32 %v275_v18, %v107_v62  ;;  %v110_v4 = vmul.f32 %v785_v43, %v101_v52 }
 0x285   :  { %v551_v51 = vpop.eup %550  ;;  %433 = vst.msk [vmem:[%s874_s3 + $0x18] sm:$0xff] %vm53_vm0, %v425_v46  ;;  %v422_v53 = vadd.f32 %v414_v30, %v279_v9  ;;  %v415_v6 = vmul.f32 %v801_v7, %v406_v50  ;;  %v284_v35 = vadd.f32 %v276_v19, %v108_v2 }
 0x286   :  { %v409_v45 = vmul.f32 %v551_v51, %v757_v14  ;;  %v278_v14 = vmul.f32 %v788_v44, %v269_v47  ;;  %v285_v8 = vadd.f32 %v277_v55, %v109_v54 }
 0x287   :  { %v553_v32 = vpop.eup %552  ;;  %430 = vst.msk [vmem:[%s874_s3] sm:$0xff] %vm53_vm0, %v422_v53  ;;  %v423_v49 = vadd.f32 %v415_v6, %v280_v38 }
 0x288   :  { %v418_v57 = vmul.f32 %v801_v7, %v409_v45  ;;  %v410_v58 = vmul.f32 %v553_v32, %v764_v20  ;;  %v286_v11 = vadd.f32 %v278_v14, %v110_v4 }
 0x289   :  { %v555_v59 = vpop.eup %554  ;;  %431 = vst.msk [vmem:[%s874_s3 + $0x8] sm:$0xff] %vm53_vm0, %v423_v49 }
 0x28a   :  { %v426_v61 = vadd.f32 %v418_v57, %v283_v56  ;;  %v419_v3 = vmul.f32 %v801_v7, %v410_v58  ;;  %v411_v5 = vmul.f32 %v555_v59, %v755_v13 }
 0x28b   :  { %v557_v0 = vpop.eup %556 }
 0x28c   :  { %434 = vst.msk [vmem:[%s874_s3 + $0x20] sm:$0xff] %vm53_vm0, %v426_v61  ;;  %v427_v20 = vadd.f32 %v419_v3, %v284_v35  ;;  %v420_v43 = vmul.f32 %v801_v7, %v411_v5  ;;  %v412_v44 = vmul.f32 %v557_v0, %v762_v17 }
 0x28e   :  { %435 = vst.msk [vmem:[%s874_s3 + $0x28] sm:$0xff] %vm53_vm0, %v427_v20  ;;  %v428_v1 = vadd.f32 %v420_v43, %v285_v8  ;;  %v421_v13 = vmul.f32 %v801_v7, %v412_v44 }
 0x290   :  { %436 = vst.msk [vmem:[%s874_s3 + $0x30] sm:$0xff] %vm53_vm0, %v428_v1  ;;  %v429_v12 = vadd.f32 %v421_v13, %v286_v11 }
 0x292   :  { %437 = vst.msk [vmem:[%s874_s3 + $0x38] sm:$0xff] %vm53_vm0, %v429_v12 }
 0x293   :  { %442 = vsyncpa [#allocation3], 1 }

</bundles_post_ra>
